<compile_context>
chip_gen: v5e
topology: v5e:2x2
jax: 0.10.0
libtpu: 0.0.40
codegen_flags: <defaults>
</compile_context>

<pallas_src>
import jax
import jax.numpy as jnp
from jax import lax
from jax.experimental import pallas as pl
from jax.experimental.pallas import tpu as pltpu

BN_EPS = 1e-5


# ------------------------------ weight folding -------------------------------

def _banded_conv_weights(w_oihw, width, n_img):
    """(Cout, Cin, 3, 3) -> (3, L, L), L = n_img*width*Cin.

    One matrix per vertical tap dh, block-diagonal over images, banded over the
    width axis (horizontal taps that fall outside [0, W) are omitted, which IS
    the zero padding), with the Cin->Cout mix folded into the lane dimension.
    On the lane-folded (H, L) layout the conv is
        y[h, :] = sum_dh  x_vpad[h + dh, :] @ M[dh]
    where x_vpad has one zero row above and below the image.
    """
    cout, cin, kh, kw = w_oihw.shape
    w32 = w_oihw.astype(jnp.float32)
    mats = []
    for dh in range(kh):
        m = jnp.zeros((width * cin, width * cout), jnp.float32)
        for dw in range(kw):
            # S[w + dw - 1, w] = 1 for in-range source columns.
            shift = jnp.eye(width, k=1 - dw, dtype=jnp.float32)
            m = m + jnp.kron(shift, w32[:, :, dh, dw].T)        # (Cin, Cout) blocks
        mats.append(jnp.kron(jnp.eye(n_img, dtype=jnp.float32), m))
    return jnp.stack(mats)


# ------------------------------ fused kernel ---------------------------------

def selective_residual_block(x_nchw, params):
    n, c, h, w = x_nchw.shape
    lanes = n * w * c                        # 128 for the demo shapes
    inv_count = 1.0 / float(n * h * w)       # BN normalizes over (N, H, W)

    # Lane-dense activation layout: (H, N*W*C); lane = n*(W*C) + w*C + c.
    x2d = jnp.transpose(x_nchw.astype(jnp.float32), (2, 0, 3, 1)).reshape(h, lanes)

    # NOTE: conv1_b / conv2_b are intentionally unused -- exactly cancelled by
    # the training-mode BN mean subtraction that immediately follows each conv.
    m1 = _banded_conv_weights(params["conv1_w"], w, n)          # (3, L, L)
    m2 = _banded_conv_weights(params["conv2_w"], w, n)
    # cb[i, j] = 1 iff lanes i and j hold the same channel: one small matmul
    # turns a per-lane row sum into a per-channel total broadcast back to lanes.
    cb = jnp.kron(jnp.ones((n * w, n * w), jnp.float32),
                  jnp.eye(c, dtype=jnp.float32))                # (L, L)

    rep = n * w
    g1 = jnp.tile(params["bn1_gamma"].astype(jnp.float32), rep).reshape(1, lanes)
    b1 = jnp.tile(params["bn1_beta"].astype(jnp.float32), rep).reshape(1, lanes)
    g2 = jnp.tile(params["bn2_gamma"].astype(jnp.float32), rep).reshape(1, lanes)
    b2 = jnp.tile(params["bn2_beta"].astype(jnp.float32), rep).reshape(1, lanes)
    ab = jnp.stack([params["a"][0], params["b"][0]]).astype(jnp.float32)

    def kernel(x_ref, m1_ref, m2_ref, cb_ref, g1_ref, b1_ref, g2_ref, b2_ref,
               ab_ref, out_ref, pad_ref):
        # Zero only the two vertical-halo rows of the padded scratch; the
        # interior is fully overwritten before each conv (scratch is reused).
        pad_ref[0:1, :] = jnp.zeros((1, lanes), jnp.float32)
        pad_ref[h + 1:h + 2, :] = jnp.zeros((1, lanes), jnp.float32)

        def conv3x3(m_ref):
            acc = jnp.dot(pad_ref[0:h, :], m_ref[0],
                          preferred_element_type=jnp.float32)
            acc = acc + jnp.dot(pad_ref[1:h + 1, :], m_ref[1],
                                preferred_element_type=jnp.float32)
            acc = acc + jnp.dot(pad_ref[2:h + 2, :], m_ref[2],
                                preferred_element_type=jnp.float32)
            return acc

        def chan_mean(v):
            # per-channel mean over (N, H, W), broadcast back onto the lane axis
            tot = jnp.dot(v, cb_ref[...], preferred_element_type=jnp.float32)
            return jnp.sum(tot, axis=0, keepdims=True) * inv_count

        def batchnorm(y, g_ref, beta_ref):
            mean = chan_mean(y)
            d = y - mean                       # two-pass variance (numerics)
            var = chan_mean(d * d)
            return d * (g_ref[...] * lax.rsqrt(var + BN_EPS)) + beta_ref[...]

        x = x_ref[...]

        # conv1 -> bn1 -> relu
        pad_ref[1:h + 1, :] = x
        r = jnp.maximum(batchnorm(conv3x3(m1_ref), g1_ref, b1_ref), 0.0)

        # conv2 -> bn2   (reuse the padded scratch; halo rows are still zero)
        pad_ref[1:h + 1, :] = r
        y = batchnorm(conv3x3(m2_ref), g2_ref, b2_ref)

        # out = relu(b * bn2 + a * x)
        out_ref[...] = jnp.maximum(y * ab_ref[1] + x * ab_ref[0], 0.0)

    out2d = pl.pallas_call(
        kernel,
        grid=(1,),
        in_specs=[
            pl.BlockSpec((h, lanes), lambda i: (0, 0)),
            pl.BlockSpec((3, lanes, lanes), lambda i: (0, 0, 0)),
            pl.BlockSpec((3, lanes, lanes), lambda i: (0, 0, 0)),
            pl.BlockSpec((lanes, lanes), lambda i: (0, 0)),
            pl.BlockSpec((1, lanes), lambda i: (0, 0)),
            pl.BlockSpec((1, lanes), lambda i: (0, 0)),
            pl.BlockSpec((1, lanes), lambda i: (0, 0)),
            pl.BlockSpec((1, lanes), lambda i: (0, 0)),
            pl.BlockSpec(memory_space=pltpu.MemorySpace.SMEM),   # a, b scalars
        ],
        out_specs=pl.BlockSpec((h, lanes), lambda i: (0, 0)),
        out_shape=jax.ShapeDtypeStruct((h, lanes), jnp.float32),
        scratch_shapes=[pltpu.VMEM((h + 2, lanes), jnp.float32)],
        compiler_params=pltpu.CompilerParams(
            dimension_semantics=("arbitrary",),
            vmem_limit_bytes=32 * 1024 * 1024),
    )(x2d, m1, m2, cb, g1, b1, g2, b2, ab)

    return jnp.transpose(out2d.reshape(h, n, w, c), (1, 3, 0, 2))


# ---------------------------- pure-JAX reference -----------------------------

def _reference(x, params):
    def conv(z, wgt, bias):
        y = lax.conv_general_dilated(z, wgt, (1, 1), ((1, 1), (1, 1)),
                                     dimension_numbers=("NCHW", "OIHW", "NCHW"))
        return y + bias.reshape(1, -1, 1, 1)

    def bn(z, g, bta):
        mean = jnp.mean(z, axis=(0, 2, 3), keepdims=True)
        var = jnp.mean(jnp.square(z - mean), axis=(0, 2, 3), keepdims=True)
        return ((z - mean) * lax.rsqrt(var + BN_EPS)
                * g.reshape(1, -1, 1, 1) + bta.reshape(1, -1, 1, 1))

    r = jnp.maximum(bn(conv(x, params["conv1_w"], params["conv1_b"]),
                       params["bn1_gamma"], params["bn1_beta"]), 0.0)
    r = bn(conv(r, params["conv2_w"], params["conv2_b"]),
           params["bn2_gamma"], params["bn2_beta"])
    return jnp.maximum(r * params["b"][0] + x * params["a"][0], 0.0)


# ----------------------------------- main -------------------------------------

if __name__ == "__main__":
    N, C, H, W = 2, 4, 16, 16
    key = jax.random.PRNGKey(0)
    kx, k1, k2, kb1, kb2, kg1, kg2, kt1, kt2 = jax.random.split(key, 9)

    x = jax.random.normal(kx, (N, C, H, W), dtype=jnp.float32)

    params = {
        "conv1_w": 0.1 * jax.random.normal(k1, (C, C, 3, 3), dtype=jnp.float32),
        "conv1_b": 0.1 * jax.random.normal(kb1, (C,), dtype=jnp.float32),
        "conv2_w": 0.1 * jax.random.normal(k2, (C, C, 3, 3), dtype=jnp.float32),
        "conv2_b": 0.1 * jax.random.normal(kb2, (C,), dtype=jnp.float32),
        "bn1_gamma": 1.0 + 0.1 * jax.random.normal(kg1, (C,), dtype=jnp.float32),
        "bn1_beta": 0.1 * jax.random.normal(kt1, (C,), dtype=jnp.float32),
        "bn2_gamma": 1.0 + 0.1 * jax.random.normal(kg2, (C,), dtype=jnp.float32),
        "bn2_beta": 0.1 * jax.random.normal(kt2, (C,), dtype=jnp.float32),
        "a": jnp.ones((1,), dtype=jnp.float32),   # nn.Parameter(torch.ones(1))
        "b": jnp.ones((1,), dtype=jnp.float32),   # nn.Parameter(torch.ones(1))
    }

    block = jax.jit(selective_residual_block)
    out = jax.block_until_ready(block(x, params))
    ref = jax.block_until_ready(_reference(x, params))

    assert out.shape == (N, C, H, W)
    assert jnp.allclose(out, ref, atol=1e-4, rtol=1e-4), (
        f"max abs diff {jnp.max(jnp.abs(out - ref))}")
    print("KERNEL_OK")
</pallas_src>

<mosaic_0001>
module attributes {stable_mosaic.version = 11 : i64} {
  func.func @kernel(%arg0: i32, %arg1: memref<16x128xf32, #tpu.memory_space<vmem>>, %arg2: memref<3x128x128xf32, #tpu.memory_space<vmem>>, %arg3: memref<3x128x128xf32, #tpu.memory_space<vmem>>, %arg4: memref<128x128xf32, #tpu.memory_space<vmem>>, %arg5: memref<1x128xf32, #tpu.memory_space<vmem>>, %arg6: memref<1x128xf32, #tpu.memory_space<vmem>>, %arg7: memref<1x128xf32, #tpu.memory_space<vmem>>, %arg8: memref<1x128xf32, #tpu.memory_space<vmem>>, %arg9: memref<2xf32, #tpu.memory_space<smem>>, %arg10: memref<16x128xf32, #tpu.memory_space<vmem>>, %arg11: memref<18x128xf32, #tpu.memory_space<vmem>>) attributes {dimension_semantics = [#tpu.dimension_semantics<arbitrary>], iteration_bounds = array<i64: 1>, scalar_prefetch = 0 : i64, scratch_operands = 1 : i64, tpu.core_type = #tpu.core_type<tc>, window_params = [{pipeline_mode = #tpu.pipeline_mode<synchronous>, transform_indices = @transform_0, window_bounds = array<i64: 16, 128>}, {pipeline_mode = #tpu.pipeline_mode<synchronous>, transform_indices = @transform_1, window_bounds = array<i64: 3, 128, 128>}, {pipeline_mode = #tpu.pipeline_mode<synchronous>, transform_indices = @transform_2, window_bounds = array<i64: 3, 128, 128>}, {pipeline_mode = #tpu.pipeline_mode<synchronous>, transform_indices = @transform_3, window_bounds = array<i64: 128, 128>}, {pipeline_mode = #tpu.pipeline_mode<synchronous>, transform_indices = @transform_4, window_bounds = array<i64: 1, 128>}, {pipeline_mode = #tpu.pipeline_mode<synchronous>, transform_indices = @transform_5, window_bounds = array<i64: 1, 128>}, {pipeline_mode = #tpu.pipeline_mode<synchronous>, transform_indices = @transform_6, window_bounds = array<i64: 1, 128>}, {pipeline_mode = #tpu.pipeline_mode<synchronous>, transform_indices = @transform_7, window_bounds = array<i64: 1, 128>}, {transform_indices = @transform_8, window_bounds = array<i64: 2>}, {pipeline_mode = #tpu.pipeline_mode<synchronous>, transform_indices = @transform_9, window_bounds = array<i64: 16, 128>}]} {
    %cst = arith.constant 0.000000e+00 : f32
    %0 = vector.broadcast %cst : f32 to vector<1x128xf32>
    %c0 = arith.constant 0 : index
    %c0_0 = arith.constant 0 : index
    %1 = vector.load %arg11[%c0, %c0_0] : memref<18x128xf32, #tpu.memory_space<vmem>>, vector<1x128xf32>
    tpu.vector_store %arg11[%c0, %c0_0], %0 {strides = array<i32>} : memref<18x128xf32, #tpu.memory_space<vmem>>, vector<1x128xf32>,
    %cst_1 = arith.constant 0.000000e+00 : f32
    %2 = vector.broadcast %cst_1 : f32 to vector<1x128xf32>
    %c17 = arith.constant 17 : index
    %c0_2 = arith.constant 0 : index
    %3 = vector.load %arg11[%c17, %c0_2] : memref<18x128xf32, #tpu.memory_space<vmem>>, vector<1x128xf32>
    tpu.vector_store %arg11[%c17, %c0_2], %2 {strides = array<i32>} : memref<18x128xf32, #tpu.memory_space<vmem>>, vector<1x128xf32>,
    %c0_3 = arith.constant 0 : index
    %c0_4 = arith.constant 0 : index
    %4 = vector.load %arg1[%c0_3, %c0_4] : memref<16x128xf32, #tpu.memory_space<vmem>>, vector<16x128xf32>
    %c1 = arith.constant 1 : index
    %c0_5 = arith.constant 0 : index
    %5 = vector.load %arg11[%c1, %c0_5] : memref<18x128xf32, #tpu.memory_space<vmem>>, vector<16x128xf32>
    tpu.vector_store %arg11[%c1, %c0_5], %4 {strides = array<i32>} : memref<18x128xf32, #tpu.memory_space<vmem>>, vector<16x128xf32>,
    %c0_6 = arith.constant 0 : index
    %c0_7 = arith.constant 0 : index
    %6 = vector.load %arg11[%c0_6, %c0_7] : memref<18x128xf32, #tpu.memory_space<vmem>>, vector<16x128xf32>
    %c0_8 = arith.constant 0 : index
    %c0_9 = arith.constant 0 : index
    %c0_10 = arith.constant 0 : index
    %7 = vector.load %arg2[%c0_8, %c0_9, %c0_10] : memref<3x128x128xf32, #tpu.memory_space<vmem>>, vector<1x128x128xf32>
    %8 = vector.shape_cast %7 : vector<1x128x128xf32> to vector<128x128xf32>
    %cst_11 = arith.constant dense<0.000000e+00> : vector<16x128xf32>
    %9 = tpu.matmul %6, %8, %cst_11 {dimension_numbers = #tpu.dot_dimension_numbers<[1], [0], [0], [1], [0, 0, 1, 1], [], []>} : vector<16x128xf32>, vector<128x128xf32>, vector<16x128xf32> -> vector<16x128xf32>
    %c1_12 = arith.constant 1 : index
    %c0_13 = arith.constant 0 : index
    %10 = vector.load %arg11[%c1_12, %c0_13] : memref<18x128xf32, #tpu.memory_space<vmem>>, vector<16x128xf32>
    %c1_14 = arith.constant 1 : index
    %c0_15 = arith.constant 0 : index
    %c0_16 = arith.constant 0 : index
    %11 = vector.load %arg2[%c1_14, %c0_15, %c0_16] : memref<3x128x128xf32, #tpu.memory_space<vmem>>, vector<1x128x128xf32>
    %12 = vector.shape_cast %11 : vector<1x128x128xf32> to vector<128x128xf32>
    %cst_17 = arith.constant dense<0.000000e+00> : vector<16x128xf32>
    %13 = tpu.matmul %10, %12, %cst_17 {dimension_numbers = #tpu.dot_dimension_numbers<[1], [0], [0], [1], [0, 0, 1, 1], [], []>} : vector<16x128xf32>, vector<128x128xf32>, vector<16x128xf32> -> vector<16x128xf32>
    %14 = arith.addf %9, %13 : vector<16x128xf32>
    %c2 = arith.constant 2 : index
    %c0_18 = arith.constant 0 : index
    %15 = vector.load %arg11[%c2, %c0_18] : memref<18x128xf32, #tpu.memory_space<vmem>>, vector<16x128xf32>
    %c2_19 = arith.constant 2 : index
    %c0_20 = arith.constant 0 : index
    %c0_21 = arith.constant 0 : index
    %16 = vector.load %arg2[%c2_19, %c0_20, %c0_21] : memref<3x128x128xf32, #tpu.memory_space<vmem>>, vector<1x128x128xf32>
    %17 = vector.shape_cast %16 : vector<1x128x128xf32> to vector<128x128xf32>
    %cst_22 = arith.constant dense<0.000000e+00> : vector<16x128xf32>
    %18 = tpu.matmul %15, %17, %cst_22 {dimension_numbers = #tpu.dot_dimension_numbers<[1], [0], [0], [1], [0, 0, 1, 1], [], []>} : vector<16x128xf32>, vector<128x128xf32>, vector<16x128xf32> -> vector<16x128xf32>
    %19 = arith.addf %14, %18 : vector<16x128xf32>
    %c0_23 = arith.constant 0 : index
    %c0_24 = arith.constant 0 : index
    %20 = vector.load %arg4[%c0_23, %c0_24] : memref<128x128xf32, #tpu.memory_space<vmem>>, vector<128x128xf32>
    %cst_25 = arith.constant dense<0.000000e+00> : vector<16x128xf32>
    %21 = tpu.matmul %19, %20, %cst_25 {dimension_numbers = #tpu.dot_dimension_numbers<[1], [0], [0], [1], [0, 0, 1, 1], [], []>} : vector<16x128xf32>, vector<128x128xf32>, vector<16x128xf32> -> vector<16x128xf32>
    %cst_26 = arith.constant dense<0.000000e+00> : vector<128xf32>
    %22 = vector.multi_reduction <add>, %21, %cst_26 [0] : vector<16x128xf32> to vector<128xf32>
    %23 = vector.shape_cast %22 : vector<128xf32> to vector<1x128xf32>
    %cst_27 = arith.constant 0.001953125 : f32
    %24 = vector.broadcast %cst_27 : f32 to vector<1x128xf32>
    %25 = arith.mulf %23, %24 : vector<1x128xf32>
    %26 = vector.broadcast %25 : vector<1x128xf32> to vector<16x128xf32>
    %27 = arith.subf %19, %26 : vector<16x128xf32>
    %28 = arith.mulf %27, %27 : vector<16x128xf32>
    %c0_28 = arith.constant 0 : index
    %c0_29 = arith.constant 0 : index
    %29 = vector.load %arg4[%c0_28, %c0_29] : memref<128x128xf32, #tpu.memory_space<vmem>>, vector<128x128xf32>
    %cst_30 = arith.constant dense<0.000000e+00> : vector<16x128xf32>
    %30 = tpu.matmul %28, %29, %cst_30 {dimension_numbers = #tpu.dot_dimension_numbers<[1], [0], [0], [1], [0, 0, 1, 1], [], []>} : vector<16x128xf32>, vector<128x128xf32>, vector<16x128xf32> -> vector<16x128xf32>
    %cst_31 = arith.constant dense<0.000000e+00> : vector<128xf32>
    %31 = vector.multi_reduction <add>, %30, %cst_31 [0] : vector<16x128xf32> to vector<128xf32>
    %32 = vector.shape_cast %31 : vector<128xf32> to vector<1x128xf32>
    %cst_32 = arith.constant 0.001953125 : f32
    %33 = vector.broadcast %cst_32 : f32 to vector<1x128xf32>
    %34 = arith.mulf %32, %33 : vector<1x128xf32>
    %c0_33 = arith.constant 0 : index
    %c0_34 = arith.constant 0 : index
    %35 = vector.load %arg5[%c0_33, %c0_34] : memref<1x128xf32, #tpu.memory_space<vmem>>, vector<1x128xf32>
    %cst_35 = arith.constant 9.99999974E-6 : f32
    %36 = vector.broadcast %cst_35 : f32 to vector<1x128xf32>
    %37 = arith.addf %34, %36 : vector<1x128xf32>
    %38 = math.rsqrt %37 : vector<1x128xf32>
    %39 = arith.mulf %35, %38 : vector<1x128xf32>
    %40 = vector.broadcast %39 : vector<1x128xf32> to vector<16x128xf32>
    %41 = arith.mulf %27, %40 : vector<16x128xf32>
    %c0_36 = arith.constant 0 : index
    %c0_37 = arith.constant 0 : index
    %42 = vector.load %arg6[%c0_36, %c0_37] : memref<1x128xf32, #tpu.memory_space<vmem>>, vector<1x128xf32>
    %43 = vector.broadcast %42 : vector<1x128xf32> to vector<16x128xf32>
    %44 = arith.addf %41, %43 : vector<16x128xf32>
    %cst_38 = arith.constant 0.000000e+00 : f32
    %45 = vector.broadcast %cst_38 : f32 to vector<16x128xf32>
    %46 = arith.maximumf %44, %45 : vector<16x128xf32>
    %c1_39 = arith.constant 1 : index
    %c0_40 = arith.constant 0 : index
    %47 = vector.load %arg11[%c1_39, %c0_40] : memref<18x128xf32, #tpu.memory_space<vmem>>, vector<16x128xf32>
    tpu.vector_store %arg11[%c1_39, %c0_40], %46 {strides = array<i32>} : memref<18x128xf32, #tpu.memory_space<vmem>>, vector<16x128xf32>,
    %c0_41 = arith.constant 0 : index
    %c0_42 = arith.constant 0 : index
    %48 = vector.load %arg11[%c0_41, %c0_42] : memref<18x128xf32, #tpu.memory_space<vmem>>, vector<16x128xf32>
    %c0_43 = arith.constant 0 : index
    %c0_44 = arith.constant 0 : index
    %c0_45 = arith.constant 0 : index
    %49 = vector.load %arg3[%c0_43, %c0_44, %c0_45] : memref<3x128x128xf32, #tpu.memory_space<vmem>>, vector<1x128x128xf32>
    %50 = vector.shape_cast %49 : vector<1x128x128xf32> to vector<128x128xf32>
    %cst_46 = arith.constant dense<0.000000e+00> : vector<16x128xf32>
    %51 = tpu.matmul %48, %50, %cst_46 {dimension_numbers = #tpu.dot_dimension_numbers<[1], [0], [0], [1], [0, 0, 1, 1], [], []>} : vector<16x128xf32>, vector<128x128xf32>, vector<16x128xf32> -> vector<16x128xf32>
    %c1_47 = arith.constant 1 : index
    %c0_48 = arith.constant 0 : index
    %52 = vector.load %arg11[%c1_47, %c0_48] : memref<18x128xf32, #tpu.memory_space<vmem>>, vector<16x128xf32>
    %c1_49 = arith.constant 1 : index
    %c0_50 = arith.constant 0 : index
    %c0_51 = arith.constant 0 : index
    %53 = vector.load %arg3[%c1_49, %c0_50, %c0_51] : memref<3x128x128xf32, #tpu.memory_space<vmem>>, vector<1x128x128xf32>
    %54 = vector.shape_cast %53 : vector<1x128x128xf32> to vector<128x128xf32>
    %cst_52 = arith.constant dense<0.000000e+00> : vector<16x128xf32>
    %55 = tpu.matmul %52, %54, %cst_52 {dimension_numbers = #tpu.dot_dimension_numbers<[1], [0], [0], [1], [0, 0, 1, 1], [], []>} : vector<16x128xf32>, vector<128x128xf32>, vector<16x128xf32> -> vector<16x128xf32>
    %56 = arith.addf %51, %55 : vector<16x128xf32>
    %c2_53 = arith.constant 2 : index
    %c0_54 = arith.constant 0 : index
    %57 = vector.load %arg11[%c2_53, %c0_54] : memref<18x128xf32, #tpu.memory_space<vmem>>, vector<16x128xf32>
    %c2_55 = arith.constant 2 : index
    %c0_56 = arith.constant 0 : index
    %c0_57 = arith.constant 0 : index
    %58 = vector.load %arg3[%c2_55, %c0_56, %c0_57] : memref<3x128x128xf32, #tpu.memory_space<vmem>>, vector<1x128x128xf32>
    %59 = vector.shape_cast %58 : vector<1x128x128xf32> to vector<128x128xf32>
    %cst_58 = arith.constant dense<0.000000e+00> : vector<16x128xf32>
    %60 = tpu.matmul %57, %59, %cst_58 {dimension_numbers = #tpu.dot_dimension_numbers<[1], [0], [0], [1], [0, 0, 1, 1], [], []>} : vector<16x128xf32>, vector<128x128xf32>, vector<16x128xf32> -> vector<16x128xf32>
    %61 = arith.addf %56, %60 : vector<16x128xf32>
    %c0_59 = arith.constant 0 : index
    %c0_60 = arith.constant 0 : index
    %62 = vector.load %arg4[%c0_59, %c0_60] : memref<128x128xf32, #tpu.memory_space<vmem>>, vector<128x128xf32>
    %cst_61 = arith.constant dense<0.000000e+00> : vector<16x128xf32>
    %63 = tpu.matmul %61, %62, %cst_61 {dimension_numbers = #tpu.dot_dimension_numbers<[1], [0], [0], [1], [0, 0, 1, 1], [], []>} : vector<16x128xf32>, vector<128x128xf32>, vector<16x128xf32> -> vector<16x128xf32>
    %cst_62 = arith.constant dense<0.000000e+00> : vector<128xf32>
    %64 = vector.multi_reduction <add>, %63, %cst_62 [0] : vector<16x128xf32> to vector<128xf32>
    %65 = vector.shape_cast %64 : vector<128xf32> to vector<1x128xf32>
    %cst_63 = arith.constant 0.001953125 : f32
    %66 = vector.broadcast %cst_63 : f32 to vector<1x128xf32>
    %67 = arith.mulf %65, %66 : vector<1x128xf32>
    %68 = vector.broadcast %67 : vector<1x128xf32> to vector<16x128xf32>
    %69 = arith.subf %61, %68 : vector<16x128xf32>
    %70 = arith.mulf %69, %69 : vector<16x128xf32>
    %c0_64 = arith.constant 0 : index
    %c0_65 = arith.constant 0 : index
    %71 = vector.load %arg4[%c0_64, %c0_65] : memref<128x128xf32, #tpu.memory_space<vmem>>, vector<128x128xf32>
    %cst_66 = arith.constant dense<0.000000e+00> : vector<16x128xf32>
    %72 = tpu.matmul %70, %71, %cst_66 {dimension_numbers = #tpu.dot_dimension_numbers<[1], [0], [0], [1], [0, 0, 1, 1], [], []>} : vector<16x128xf32>, vector<128x128xf32>, vector<16x128xf32> -> vector<16x128xf32>
    %cst_67 = arith.constant dense<0.000000e+00> : vector<128xf32>
    %73 = vector.multi_reduction <add>, %72, %cst_67 [0] : vector<16x128xf32> to vector<128xf32>
    %74 = vector.shape_cast %73 : vector<128xf32> to vector<1x128xf32>
    %cst_68 = arith.constant 0.001953125 : f32
    %75 = vector.broadcast %cst_68 : f32 to vector<1x128xf32>
    %76 = arith.mulf %74, %75 : vector<1x128xf32>
    %c0_69 = arith.constant 0 : index
    %c0_70 = arith.constant 0 : index
    %77 = vector.load %arg7[%c0_69, %c0_70] : memref<1x128xf32, #tpu.memory_space<vmem>>, vector<1x128xf32>
    %cst_71 = arith.constant 9.99999974E-6 : f32
    %78 = vector.broadcast %cst_71 : f32 to vector<1x128xf32>
    %79 = arith.addf %76, %78 : vector<1x128xf32>
    %80 = math.rsqrt %79 : vector<1x128xf32>
    %81 = arith.mulf %77, %80 : vector<1x128xf32>
    %82 = vector.broadcast %81 : vector<1x128xf32> to vector<16x128xf32>
    %83 = arith.mulf %69, %82 : vector<16x128xf32>
    %c0_72 = arith.constant 0 : index
    %c0_73 = arith.constant 0 : index
    %84 = vector.load %arg8[%c0_72, %c0_73] : memref<1x128xf32, #tpu.memory_space<vmem>>, vector<1x128xf32>
    %85 = vector.broadcast %84 : vector<1x128xf32> to vector<16x128xf32>
    %86 = arith.addf %83, %85 : vector<16x128xf32>
    %c1_74 = arith.constant 1 : index
    %87 = memref.load %arg9[%c1_74] : memref<2xf32, #tpu.memory_space<smem>>
    %88 = vector.broadcast %87 : f32 to vector<16x128xf32>
    %89 = arith.mulf %86, %88 : vector<16x128xf32>
    %c0_75 = arith.constant 0 : index
    %90 = memref.load %arg9[%c0_75] : memref<2xf32, #tpu.memory_space<smem>>
    %91 = vector.broadcast %90 : f32 to vector<16x128xf32>
    %92 = arith.mulf %4, %91 : vector<16x128xf32>
    %93 = arith.addf %89, %92 : vector<16x128xf32>
    %cst_76 = arith.constant 0.000000e+00 : f32
    %94 = vector.broadcast %cst_76 : f32 to vector<16x128xf32>
    %95 = arith.maximumf %93, %94 : vector<16x128xf32>
    %c0_77 = arith.constant 0 : index
    %c0_78 = arith.constant 0 : index
    %96 = vector.load %arg10[%c0_77, %c0_78] : memref<16x128xf32, #tpu.memory_space<vmem>>, vector<16x128xf32>
    tpu.vector_store %arg10[%c0_77, %c0_78], %95 {strides = array<i32>} : memref<16x128xf32, #tpu.memory_space<vmem>>, vector<16x128xf32>,
    return
  }
  func.func @transform_0(%arg0: i32) -> (i32, i32) {
    %c0_i32 = arith.constant 0 : i32
    %c0_i32_0 = arith.constant 0 : i32
    %c0_i32_1 = arith.constant 0 : i32
    return %c0_i32, %c0_i32_0 : i32, i32
  }
  func.func @transform_1(%arg0: i32) -> (i32, i32, i32) {
    %c0_i32 = arith.constant 0 : i32
    %c0_i32_0 = arith.constant 0 : i32
    %c0_i32_1 = arith.constant 0 : i32
    %c0_i32_2 = arith.constant 0 : i32
    return %c0_i32, %c0_i32_0, %c0_i32_1 : i32, i32, i32
  }
  func.func @transform_2(%arg0: i32) -> (i32, i32, i32) {
    %c0_i32 = arith.constant 0 : i32
    %c0_i32_0 = arith.constant 0 : i32
    %c0_i32_1 = arith.constant 0 : i32
    %c0_i32_2 = arith.constant 0 : i32
    return %c0_i32, %c0_i32_0, %c0_i32_1 : i32, i32, i32
  }
  func.func @transform_3(%arg0: i32) -> (i32, i32) {
    %c0_i32 = arith.constant 0 : i32
    %c0_i32_0 = arith.constant 0 : i32
    %c0_i32_1 = arith.constant 0 : i32
    return %c0_i32, %c0_i32_0 : i32, i32
  }
  func.func @transform_4(%arg0: i32) -> (i32, i32) {
    %c0_i32 = arith.constant 0 : i32
    %c0_i32_0 = arith.constant 0 : i32
    %c0_i32_1 = arith.constant 0 : i32
    return %c0_i32, %c0_i32_0 : i32, i32
  }
  func.func @transform_5(%arg0: i32) -> (i32, i32) {
    %c0_i32 = arith.constant 0 : i32
    %c0_i32_0 = arith.constant 0 : i32
    %c0_i32_1 = arith.constant 0 : i32
    return %c0_i32, %c0_i32_0 : i32, i32
  }
  func.func @transform_6(%arg0: i32) -> (i32, i32) {
    %c0_i32 = arith.constant 0 : i32
    %c0_i32_0 = arith.constant 0 : i32
    %c0_i32_1 = arith.constant 0 : i32
    return %c0_i32, %c0_i32_0 : i32, i32
  }
  func.func @transform_7(%arg0: i32) -> (i32, i32) {
    %c0_i32 = arith.constant 0 : i32
    %c0_i32_0 = arith.constant 0 : i32
    %c0_i32_1 = arith.constant 0 : i32
    return %c0_i32, %c0_i32_0 : i32, i32
  }
  func.func @transform_8(%arg0: i32) -> i32 {
    %c0_i32 = arith.constant 0 : i32
    %c0_i32_0 = arith.constant 0 : i32
    return %c0_i32 : i32
  }
  func.func @transform_9(%arg0: i32) -> (i32, i32) {
    %c0_i32 = arith.constant 0 : i32
    %c0_i32_0 = arith.constant 0 : i32
    %c0_i32_1 = arith.constant 0 : i32
    return %c0_i32, %c0_i32_0 : i32, i32
  }
}

</mosaic_0001>

<bundles_post_ra>
// kernel: tile.23
= control target key start
LH: loop header
LB: loop body
LE: loop exit
PB: predicated region body
PF: predicated region fallthrough
CT: control target
= control target key end

     0   :  { %s40_s0 = inlined_call_operand.vmem [shape: f32[4], index: 0, kind: input, shape index: {}]   ;;  %s41_s1 = inlined_call_operand.vmem [shape: f32[32,4], index: 1, kind: output, shape index: {}]  }
   0x1   :  { %v4_v0 = vld [vmem:[%s40_s0] ss:$0 sm:$0xff] }
   0x2   :  { %5 = vst [vmem:[%s41_s1] sm:$0xff] %v4_v0 }
   0x3   :  { %12 = vst [vmem:[%s41_s1 + $0x8] sm:$0xff] %v4_v0 }
   0x4   :  { %13 = vst [vmem:[%s41_s1 + $0x10] sm:$0xff] %v4_v0 }
   0x5   :  { %14 = vst [vmem:[%s41_s1 + $0x18] sm:$0xff] %v4_v0 }

// kernel: tile.24
= control target key start
LH: loop header
LB: loop body
LE: loop exit
PB: predicated region body
PF: predicated region fallthrough
CT: control target
= control target key end

     0   :  { %s259_s10 = smov 124   ;;  %s260_s11 = smov 116   ;;  %vm3_vm0 = vcmask 31744   ;;  %vm9_vm1 = vcmask 1048544   ;;  %vm15_vm2 = vcmask 1015744   ;;  %vm21_vm3 = vcmask 982944   ;;  %s399_s0 = inlined_call_operand.vmem [shape: f32[32,4], index: 0, kind: input, shape index: {}]   ;;  %s400_s1 = inlined_call_operand.vmem [shape: f32[1,128], index: 1, kind: output, shape index: {}]  }
   0x1   :  { %v197_v0 = vld [vmem:[%s399_s0 + $0x1f] sm:$0x1]   ;;  %v199_v1 = vld [vmem:[%s399_s0 + $0x1d] sm:$0x1]   ;;  %v201_v2 = vld [vmem:[%s399_s0 + $0x1b] sm:$0x1]  }
   0x2   :  { %7 = vrot.lane.b32.xlu0 %v197_v0, %s259_s10  ;;  %19 = vrot.lane.b32.xlu1 %v199_v1, %s260_s11  ;;  %s261_s14 = smov 108   ;;  %v198_v3 = vld [vmem:[%s399_s0 + $0x1e] sm:$0x1]   ;;  %v200_v4 = vld [vmem:[%s399_s0 + $0x1c] sm:$0x1]   ;;  %s262_s19 = smov 120  }
   0x3   :  { %31 = vrot.lane.b32.xlu2 %v201_v2, %s261_s14  ;;  %s263_s20 = smov 112   ;;  %v202_v5 = vld [vmem:[%s399_s0 + $0x1a] sm:$0x1]   ;;  %s264_s23 = smov 104   ;;  %v203_v6 = vld [vmem:[%s399_s0 + $0x19] sm:$0x1]  }
   0x4   :  { %v204_v7 = vld [vmem:[%s399_s0 + $0x18] sm:$0x1]   ;;  %s265_s28 = smov 100   ;;  %s266_s29 = smov 96   ;;  %v205_v8 = vld [vmem:[%s399_s0 + $0x17] sm:$0x1]  }
   0x5   :  { %s267_s3 = smov 92   ;;  %v206_v9 = vld [vmem:[%s399_s0 + $0x16] sm:$0x1]   ;;  %v207_v10 = vld [vmem:[%s399_s0 + $0x15] sm:$0x1]   ;;  %s268_s8 = smov 88  }
   0x6   :  { %s269_s9 = smov 84   ;;  %v208_v11 = vld [vmem:[%s399_s0 + $0x14] sm:$0x1]   ;;  %s270_s12 = smov 80   ;;  %v209_v12 = vld [vmem:[%s399_s0 + $0x13] sm:$0x1]  }
   0x7   :  { %v210_v13 = vld [vmem:[%s399_s0 + $0x12] sm:$0x1]   ;;  %s271_s17 = smov 76   ;;  %s272_s18 = smov 72   ;;  %v211_v14 = vld [vmem:[%s399_s0 + $0x11] sm:$0x1]  }
   0x8   :  { %s273_s21 = smov 68   ;;  %v212_v15 = vld [vmem:[%s399_s0 + $0x10] sm:$0x1]   ;;  %v213_v16 = vld [vmem:[%s399_s0 + $0xf] sm:$0x1]   ;;  %s274_s26 = smov 64  }
   0x9   :  { %s275_s27 = smov 60   ;;  %v214_v17 = vld [vmem:[%s399_s0 + $0xe] sm:$0x1]   ;;  %s276_s30 = smov 56   ;;  %v215_v18 = vld [vmem:[%s399_s0 + $0xd] sm:$0x1]  }
   0xa   :  { %13 = vrot.lane.b32.xlu0 %v198_v3, %s262_s19  ;;  %25 = vrot.lane.b32.xlu1 %v200_v4, %s263_s20  ;;  %v216_v19 = vld [vmem:[%s399_s0 + $0xc] sm:$0x1]   ;;  %s277_s6 = smov 52   ;;  %s278_s7 = smov 48   ;;  %v217_v20 = vld [vmem:[%s399_s0 + $0xb] sm:$0x1]  }
   0xb   :  { %37 = vrot.lane.b32.xlu2 %v202_v5, %s264_s23  ;;  %s279_s10 = smov 44   ;;  %v218_v21 = vld [vmem:[%s399_s0 + $0xa] sm:$0x1]   ;;  %v219_v22 = vld [vmem:[%s399_s0 + $0x9] sm:$0x1]   ;;  %s280_s15 = smov 40  }
   0xc   :  { %s281_s16 = smov 36   ;;  %v220_v23 = vld [vmem:[%s399_s0 + $0x8] sm:$0x1]   ;;  %s282_s19 = smov 32   ;;  %v221_v24 = vld [vmem:[%s399_s0 + $0x7] sm:$0x1]  }
   0xd   :  { %v222_v25 = vld [vmem:[%s399_s0 + $0x6] sm:$0x1]   ;;  %s283_s24 = smov 28   ;;  %s284_s25 = smov 24   ;;  %v223_v26 = vld [vmem:[%s399_s0 + $0x5] sm:$0x1]  }
   0xe   :  { %v224_v27 = vld [vmem:[%s399_s0 + $0x4] sm:$0x1]   ;;  %v225_v28 = vld [vmem:[%s399_s0 + $0x3] sm:$0x1]   ;;  %s286_s4 = smov 16   ;;  %s287_s5 = smov 12  }
   0xf   :  { %v226_v29 = vld [vmem:[%s399_s0 + $0x2] sm:$0x1]   ;;  %v227_v30 = vld [vmem:[%s399_s0 + $0x1] sm:$0x1]   ;;  %s289_s11 = smov 4   ;;  %vm27_vm4 = vcmask 950144  }
  0x10   :  { %v2_v31 = vld [vmem:[%s399_s0] sm:$0x1]   ;;  %vm33_vm5 = vcmask 917344   ;;  %vm39_vm6 = vcmask 884544   ;;  %vm45_vm7 = vcmask 851744   ;;  %vm51_vm8 = vcmask 818944  }
  0x11   :  { %4 = vst.msk [vmem:[#allocation0] sm:$0x1] %vm3_vm0, %v2_v31   ;;  %vm57_vm9 = vcmask 786144   ;;  %vm63_vm10 = vcmask 753344   ;;  %vm69_vm11 = vcmask 720544   ;;  %vm75_vm12 = vcmask 687744  }
  0x12   :  { %43 = vrot.lane.b32.xlu0 %v203_v6, %s265_s28  ;;  %49 = vrot.lane.b32.xlu1 %v204_v7, %s266_s29  ;;  %s285_s28 = smov 20   ;;  %vm81_vm13 = vcmask 654944   ;;  %vm87_vm14 = vcmask 622144   ;;  %vm93_vm15 = vcmask 589344   ;;  %vm99_vm0 = vcmask 556544  }
  0x13   :  { %55 = vrot.lane.b32.xlu2 %v205_v8, %s267_s3 }
  0x1a   :  { %61 = vrot.lane.b32.xlu0 %v206_v9, %s268_s8  ;;  %67 = vrot.lane.b32.xlu1 %v207_v10, %s269_s9  ;;  %s288_s8 = smov 8  }
  0x1b   :  { %73 = vrot.lane.b32.xlu2 %v208_v11, %s270_s12 }
  0x22   :  { %79 = vrot.lane.b32.xlu0 %v209_v12, %s271_s17  ;;  %85 = vrot.lane.b32.xlu1 %v210_v13, %s272_s18 }
  0x23   :  { %91 = vrot.lane.b32.xlu2 %v211_v14, %s273_s21 }
  0x2a   :  { %97 = vrot.lane.b32.xlu0 %v212_v15, %s274_s26  ;;  %103 = vrot.lane.b32.xlu1 %v213_v16, %s275_s27 }
  0x2b   :  { %109 = vrot.lane.b32.xlu2 %v214_v17, %s276_s30 }
  0x32   :  { %115 = vrot.lane.b32.xlu0 %v215_v18, %s277_s6  ;;  %121 = vrot.lane.b32.xlu1 %v216_v19, %s278_s7 }
  0x33   :  { %127 = vrot.lane.b32.xlu2 %v217_v20, %s279_s10 }
  0x3a   :  { %133 = vrot.lane.b32.xlu0 %v218_v21, %s280_s15  ;;  %139 = vrot.lane.b32.xlu1 %v219_v22, %s281_s16 }
  0x3b   :  { %145 = vrot.lane.b32.xlu2 %v220_v23, %s282_s19 }
  0x42   :  { %151 = vrot.lane.b32.xlu0 %v221_v24, %s283_s24  ;;  %157 = vrot.lane.b32.xlu1 %v222_v25, %s284_s25 }
  0x43   :  { %163 = vrot.lane.b32.xlu2 %v223_v26, %s285_s28 }
  0x4a   :  { %169 = vrot.lane.b32.xlu0 %v224_v27, %s286_s4  ;;  %175 = vrot.lane.b32.xlu1 %v225_v28, %s287_s5 }
  0x4b   :  { %181 = vrot.lane.b32.xlu2 %v226_v29, %s288_s8 }
  0x52   :  { %187 = vrot.lane.b32.xlu0 %v227_v30, %s289_s11 }
  0x5d   :  { %v32_v32 = vpop.permute.xlu2 %31  }
  0x65   :  { %v38_v33 = vpop.permute.xlu2 %37  }
  0x6d   :  { %v56_v34 = vpop.permute.xlu2 %55  }
  0x74   :  { %v8_v35 = vpop.permute.xlu0 %7   ;;  %v20_v36 = vpop.permute.xlu1 %19  }
  0x75   :  { %10 = vst.msk [vmem:[#allocation0] sm:$0x1] %vm9_vm1, %v8_v35   ;;  %v74_v37 = vpop.permute.xlu2 %73   ;;  %vm105_vm1 = vcmask 523744  }
  0x7c   :  { %v14_v38 = vpop.permute.xlu0 %13   ;;  %v26_v39 = vpop.permute.xlu1 %25  }
  0x7d   :  { %16 = vst.msk [vmem:[#allocation0] sm:$0x1] %vm15_vm2, %v14_v38   ;;  %v92_v40 = vpop.permute.xlu2 %91   ;;  %vm111_vm2 = vcmask 490944  }
  0x7e   :  { %22 = vst.msk [vmem:[#allocation0] sm:$0x1] %vm21_vm3, %v20_v36   ;;  %vm117_vm3 = vcmask 458144  }
  0x7f   :  { %28 = vst.msk [vmem:[#allocation0] sm:$0x1] %vm27_vm4, %v26_v39   ;;  %vm123_vm4 = vcmask 425344  }
  0x80   :  { %34 = vst.msk [vmem:[#allocation0] sm:$0x1] %vm33_vm5, %v32_v32   ;;  %vm129_vm5 = vcmask 392544  }
  0x81   :  { %40 = vst.msk [vmem:[#allocation0] sm:$0x1] %vm39_vm6, %v38_v33   ;;  %vm135_vm6 = vcmask 359744  }
  0x84   :  { %v44_v41 = vpop.permute.xlu0 %43   ;;  %v50_v42 = vpop.permute.xlu1 %49  }
  0x85   :  { %46 = vst.msk [vmem:[#allocation0] sm:$0x1] %vm45_vm7, %v44_v41   ;;  %v110_v43 = vpop.permute.xlu2 %109   ;;  %vm141_vm7 = vcmask 326944  }
  0x86   :  { %52 = vst.msk [vmem:[#allocation0] sm:$0x1] %vm51_vm8, %v50_v42   ;;  %vm147_vm8 = vcmask 294144  }
  0x87   :  { %58 = vst.msk [vmem:[#allocation0] sm:$0x1] %vm57_vm9, %v56_v34   ;;  %vm153_vm9 = vcmask 261344  }
  0x8c   :  { %v62_v44 = vpop.permute.xlu0 %61   ;;  %v68_v45 = vpop.permute.xlu1 %67  }
  0x8d   :  { %64 = vst.msk [vmem:[#allocation0] sm:$0x1] %vm63_vm10, %v62_v44   ;;  %v128_v46 = vpop.permute.xlu2 %127   ;;  %vm159_vm10 = vcmask 228544  }
  0x8e   :  { %70 = vst.msk [vmem:[#allocation0] sm:$0x1] %vm69_vm11, %v68_v45   ;;  %vm165_vm11 = vcmask 195744  }
  0x8f   :  { %76 = vst.msk [vmem:[#allocation0] sm:$0x1] %vm75_vm12, %v74_v37   ;;  %vm171_vm12 = vcmask 162944  }
  0x94   :  { %v80_v47 = vpop.permute.xlu0 %79   ;;  %v86_v48 = vpop.permute.xlu1 %85  }
  0x95   :  { %82 = vst.msk [vmem:[#allocation0] sm:$0x1] %vm81_vm13, %v80_v47   ;;  %v146_v49 = vpop.permute.xlu2 %145   ;;  %vm177_vm13 = vcmask 130144  }
  0x96   :  { %88 = vst.msk [vmem:[#allocation0] sm:$0x1] %vm87_vm14, %v86_v48   ;;  %vm183_vm14 = vcmask 97344  }
  0x97   :  { %94 = vst.msk [vmem:[#allocation0] sm:$0x1] %vm93_vm15, %v92_v40   ;;  %vm189_vm15 = vcmask 64544  }
  0x9c   :  { %v98_v50 = vpop.permute.xlu0 %97   ;;  %v104_v51 = vpop.permute.xlu1 %103  }
  0x9d   :  { %100 = vst.msk [vmem:[#allocation0] sm:$0x1] %vm99_vm0, %v98_v50   ;;  %v164_v52 = vpop.permute.xlu2 %163  }
  0x9e   :  { %106 = vst.msk [vmem:[#allocation0] sm:$0x1] %vm105_vm1, %v104_v51  }
  0x9f   :  { %112 = vst.msk [vmem:[#allocation0] sm:$0x1] %vm111_vm2, %v110_v43  }
  0xa4   :  { %v116_v53 = vpop.permute.xlu0 %115   ;;  %v122_v54 = vpop.permute.xlu1 %121  }
  0xa5   :  { %118 = vst.msk [vmem:[#allocation0] sm:$0x1] %vm117_vm3, %v116_v53   ;;  %v182_v55 = vpop.permute.xlu2 %181  }
  0xa6   :  { %124 = vst.msk [vmem:[#allocation0] sm:$0x1] %vm123_vm4, %v122_v54  }
  0xa7   :  { %130 = vst.msk [vmem:[#allocation0] sm:$0x1] %vm129_vm5, %v128_v46  }
  0xac   :  { %v134_v56 = vpop.permute.xlu0 %133   ;;  %v140_v57 = vpop.permute.xlu1 %139  }
  0xad   :  { %136 = vst.msk [vmem:[#allocation0] sm:$0x1] %vm135_vm6, %v134_v56  }
  0xae   :  { %142 = vst.msk [vmem:[#allocation0] sm:$0x1] %vm141_vm7, %v140_v57  }
  0xaf   :  { %148 = vst.msk [vmem:[#allocation0] sm:$0x1] %vm147_vm8, %v146_v49  }
  0xb4   :  { %v152_v58 = vpop.permute.xlu0 %151   ;;  %v158_v59 = vpop.permute.xlu1 %157  }
  0xb5   :  { %154 = vst.msk [vmem:[#allocation0] sm:$0x1] %vm153_vm9, %v152_v58  }
  0xb6   :  { %160 = vst.msk [vmem:[#allocation0] sm:$0x1] %vm159_vm10, %v158_v59  }
  0xb7   :  { %166 = vst.msk [vmem:[#allocation0] sm:$0x1] %vm165_vm11, %v164_v52  }
  0xbc   :  { %v170_v60 = vpop.permute.xlu0 %169   ;;  %v176_v61 = vpop.permute.xlu1 %175  }
  0xbd   :  { %172 = vst.msk [vmem:[#allocation0] sm:$0x1] %vm171_vm12, %v170_v60  }
  0xbe   :  { %178 = vst.msk [vmem:[#allocation0] sm:$0x1] %vm177_vm13, %v176_v61  }
  0xbf   :  { %184 = vst.msk [vmem:[#allocation0] sm:$0x1] %vm183_vm14, %v182_v55  }
  0xc4   :  { %v188_v62 = vpop.permute.xlu0 %187  }
  0xc5   :  { %190 = vst.msk [vmem:[#allocation0] sm:$0x1] %vm189_vm15, %v188_v62  }
  0xcc   :  { %v193_v63 = vld [vmem:[#allocation0] sm:$0x1] }
  0xcd   :  { %196 = vst [vmem:[%s400_s1] sm:$0x1] %v193_v63 }

// kernel: selective_residual_block.1
= control target key start
LH: loop header
LB: loop body
LE: loop exit
PB: predicated region body
PF: predicated region fallthrough
CT: control target
= control target key end

     0   :  { %14 = vsyncpa [#allocation4], 0  ;;  %s659_s12 = smov [#allocation3]   ;;  %s1222_s0 = inlined_call_operand.vmem [shape: f32[16,128], index: 0, kind: input, shape index: {}]   ;;  %s1223_s1 = inlined_call_operand.vmem [shape: f32[3,128,128], index: 1, kind: input, shape index: {}]   ;;  %s1224_s2 = inlined_call_operand.vmem [shape: f32[3,128,128], index: 2, kind: input, shape index: {}]   ;;  %s1225_s3 = inlined_call_operand.vmem [shape: f32[128,128], index: 3, kind: input, shape index: {}]   ;;  %s1226_s4 = inlined_call_operand.vmem [shape: f32[1,128], index: 4, kind: input, shape index: {}]   ;;  %s1227_s5 = inlined_call_operand.vmem [shape: f32[1,128], index: 5, kind: input, shape index: {}]   ;;  %s1228_s6 = inlined_call_operand.vmem [shape: f32[1,128], index: 6, kind: input, shape index: {}]   ;;  %s1229_s7 = inlined_call_operand.vmem [shape: f32[1,128], index: 7, kind: input, shape index: {}]   ;;  %s1230_s8 = inlined_call_operand.vmem [shape: f32[2], index: 8, kind: input, shape index: {}]   ;;  %s1231_s9 = inlined_call_operand.vmem [shape: f32[16,128], index: 9, kind: output, shape index: {}]  }
   0x1   :  { %s36_s11 = sshll.u32 %s1230_s8, 4  ;;  %s37_s11 = int_to_ptr.vmem [resolvable:$true] %s36_s11 }
   0x2   :  { %39 = dma.vmem_to_smem %s37_s11, 16, %s659_s12, [#allocation4]  }
   0x3   :  { %657 = dma.done.wait [#allocation4], 16  }
   0x4   :  { %658 = vsyncadd [#allocation4], 4294967280 }
   0x5   :  { %44 = sfence }
   0x6   :  { %v571_v0 = vld [vmem:[%s1223_s1 + $0x178] sm:$0xff]  ;;  %v570_v1 = vld [vmem:[%s1223_s1 + $0x170] sm:$0xff]  ;;  %v660_v5 = vmov 0.0   ;;  %v569_v6 = vld [vmem:[%s1223_s1 + $0x168] sm:$0xff] }
   0x7   :  { %v555_v2 = vld [vmem:[%s1223_s1 + $0xf8] sm:$0xff]  ;;  %153 = vmatpush.msra.mxu2 %v571_v0  ;;  %v554_v4 = vld [vmem:[%s1223_s1 + $0xf0] sm:$0xff]  ;;  %45 = vst [vmem:[#allocation2] sm:$0x1] %v660_v5  ;;  %v553_v8 = vld [vmem:[%s1223_s1 + $0xe8] sm:$0xff] }
   0x8   :  { %88 = vmatpush.msra.mxu0 %v555_v2  ;;  %v68_v3 = vld [vmem:[%s1223_s1 + $0x78] sm:$0xff]  ;;  %v67_v7 = vld [vmem:[%s1223_s1 + $0x70] sm:$0xff]  ;;  %46 = vst [vmem:[#allocation2 + $0x11] sm:$0x1] %v660_v5  ;;  %v66_v9 = vld [vmem:[%s1223_s1 + $0x68] sm:$0xff] }
   0x9   :  { %111 = vmatpush.msra.mxu1 %v68_v3  ;;  %154 = vmatpush.msra.mxu2 %v570_v1  ;;  %v568_v10 = vld [vmem:[%s1223_s1 + $0x160] sm:$0xff]  ;;  %v567_v13 = vld [vmem:[%s1223_s1 + $0x158] sm:$0xff]  ;;  %v566_v16 = vld [vmem:[%s1223_s1 + $0x150] sm:$0xff] }
   0xa   :  { %89 = vmatpush.msra.mxu0 %v554_v4  ;;  %v552_v11 = vld [vmem:[%s1223_s1 + $0xe0] sm:$0xff]  ;;  %v551_v14 = vld [vmem:[%s1223_s1 + $0xd8] sm:$0xff]  ;;  %v550_v17 = vld [vmem:[%s1223_s1 + $0xd0] sm:$0xff] }
   0xb   :  { %112 = vmatpush.msra.mxu1 %v67_v7  ;;  %155 = vmatpush.msra.mxu2 %v569_v6  ;;  %v65_v12 = vld [vmem:[%s1223_s1 + $0x60] sm:$0xff]  ;;  %v64_v15 = vld [vmem:[%s1223_s1 + $0x58] sm:$0xff]  ;;  %v63_v18 = vld [vmem:[%s1223_s1 + $0x50] sm:$0xff] }
   0xc   :  { %90 = vmatpush.msra.mxu0 %v553_v8  ;;  %v565_v19 = vld [vmem:[%s1223_s1 + $0x148] sm:$0xff]  ;;  %v564_v22 = vld [vmem:[%s1223_s1 + $0x140] sm:$0xff]  ;;  %v563_v25 = vld [vmem:[%s1223_s1 + $0x138] sm:$0xff] }
   0xd   :  { %113 = vmatpush.msra.mxu1 %v66_v9  ;;  %156 = vmatpush.msra.mxu2 %v568_v10  ;;  %v549_v20 = vld [vmem:[%s1223_s1 + $0xc8] sm:$0xff]  ;;  %v548_v23 = vld [vmem:[%s1223_s1 + $0xc0] sm:$0xff]  ;;  %v547_v26 = vld [vmem:[%s1223_s1 + $0xb8] sm:$0xff] }
   0xe   :  { %91 = vmatpush.msra.mxu0 %v552_v11  ;;  %v62_v21 = vld [vmem:[%s1223_s1 + $0x48] sm:$0xff]  ;;  %v61_v24 = vld [vmem:[%s1223_s1 + $0x40] sm:$0xff]  ;;  %v60_v28 = vld [vmem:[%s1223_s1 + $0x38] sm:$0xff] }
   0xf   :  { %114 = vmatpush.msra.mxu1 %v65_v12  ;;  %157 = vmatpush.msra.mxu2 %v567_v13  ;;  %v795_v27 = vld [vmem:[%s1222_s0] sm:$0xff]  ;;  %v803_v29 = vld [vmem:[%s1222_s0 + $0x8] sm:$0xff]  ;;  %v562_v30 = vld [vmem:[%s1223_s1 + $0x130] sm:$0xff] }
  0x10   :  { %92 = vmatpush.msra.mxu0 %v551_v14  ;;  %49 = vst [vmem:[#allocation2 + $0x1] sm:$0xff] %v795_v27  ;;  %v546_v31 = vld [vmem:[%s1223_s1 + $0xb0] sm:$0xff]  ;;  %v816_v32 = vld [vmem:[%s1225_s3 + $0x78] sm:$0xff]  ;;  %v561_v35 = vld [vmem:[%s1223_s1 + $0x128] sm:$0xff] }
  0x11   :  { %115 = vmatpush.msra.mxu1 %v64_v15  ;;  %158 = vmatpush.msra.mxu2 %v566_v16  ;;  %50 = vst [vmem:[#allocation2 + $0x9] sm:$0xff] %v803_v29  ;;  %v59_v33 = vld [vmem:[%s1223_s1 + $0x30] sm:$0xff]  ;;  %v545_v36 = vld [vmem:[%s1223_s1 + $0xa8] sm:$0xff]  ;;  %v560_v39 = vld [vmem:[%s1223_s1 + $0x120] sm:$0xff] }
  0x12   :  { %93 = vmatpush.msra.mxu0 %v550_v17  ;;  %v824_v34 = vld [vmem:[%s1225_s3 + $0x70] sm:$0xff]  ;;  %194 = vmatpush.msra.mxu3 %v816_v32  ;;  %v58_v37 = vld [vmem:[%s1223_s1 + $0x28] sm:$0xff]  ;;  %v544_v40 = vld [vmem:[%s1223_s1 + $0xa0] sm:$0xff] }
  0x13   :  { %116 = vmatpush.msra.mxu1 %v63_v18  ;;  %159 = vmatpush.msra.mxu2 %v565_v19  ;;  %v839_v38 = vld [vmem:[%s1225_s3 + $0x68] sm:$0xff]  ;;  %v57_v41 = vld [vmem:[%s1223_s1 + $0x20] sm:$0xff]  ;;  %v559_v43 = vld [vmem:[%s1223_s1 + $0x118] sm:$0xff] }
  0x14   :  { %94 = vmatpush.msra.mxu0 %v549_v20  ;;  %195 = vmatpush.msra.mxu3 %v824_v34  ;;  %v854_v42 = vld [vmem:[%s1225_s3 + $0x60] sm:$0xff]  ;;  %v543_v44 = vld [vmem:[%s1223_s1 + $0x98] sm:$0xff]  ;;  %v558_v47 = vld [vmem:[%s1223_s1 + $0x110] sm:$0xff] }
  0x15   :  { %117 = vmatpush.msra.mxu1 %v62_v21  ;;  %160 = vmatpush.msra.mxu2 %v564_v22  ;;  %v56_v45 = vld [vmem:[%s1223_s1 + $0x18] sm:$0xff]  ;;  %v542_v48 = vld [vmem:[%s1223_s1 + $0x90] sm:$0xff]  ;;  %v557_v51 = vld [vmem:[%s1223_s1 + $0x108] sm:$0xff] }
  0x16   :  { %95 = vmatpush.msra.mxu0 %v548_v23  ;;  %196 = vmatpush.msra.mxu3 %v839_v38  ;;  %v869_v46 = vld [vmem:[%s1225_s3 + $0x58] sm:$0xff]  ;;  %v55_v49 = vld [vmem:[%s1223_s1 + $0x10] sm:$0xff]  ;;  %v541_v52 = vld [vmem:[%s1223_s1 + $0x88] sm:$0xff] }
  0x17   :  { %118 = vmatpush.msra.mxu1 %v61_v24  ;;  %161 = vmatpush.msra.mxu2 %v563_v25  ;;  %v884_v50 = vld [vmem:[%s1225_s3 + $0x50] sm:$0xff]  ;;  %v54_v53 = vld [vmem:[%s1223_s1 + $0x8] sm:$0xff]  ;;  %v556_v55 = vld [vmem:[%s1223_s1 + $0x100] sm:$0xff] }
  0x18   :  { %96 = vmatpush.msra.mxu0 %v547_v26  ;;  %197 = vmatpush.msra.mxu3 %v854_v42  ;;  %v899_v54 = vld [vmem:[%s1225_s3 + $0x48] sm:$0xff]  ;;  %v540_v56 = vld [vmem:[%s1223_s1 + $0x80] sm:$0xff]  ;;  %v921_v61 = vld [vmem:[%s1225_s3 + $0x38] sm:$0xff] }
  0x19   :  { %119 = vmatpush.msra.mxu1 %v60_v28  ;;  %162 = vmatpush.msra.mxu2 %v562_v30  ;;  %v134_v57 = vld [vmem:[#allocation2 + $0x2] sm:$0xff]  ;;  %v928_v62 = vld [vmem:[%s1225_s3 + $0x30] sm:$0xff]  ;;  %v949_v3 = vld [vmem:[%s1225_s3 + $0x18] sm:$0xff] }
  0x1a   :  { %97 = vmatpush.msra.mxu0 %v546_v31  ;;  %198 = vmatpush.msra.mxu3 %v869_v46  ;;  %v53_v58 = vld [vmem:[%s1223_s1] sm:$0xff]  ;;  %v135_v63 = vld [vmem:[#allocation2 + $0xa] sm:$0xff] }
  0x1b   :  { %120 = vmatpush.msra.mxu1 %v59_v33  ;;  %163 = vmatpush.msra.mxu2 %v561_v35  ;;  %v51_v59 = vld [vmem:[#allocation2] sm:$0xff]  ;;  %v935_v0 = vld [vmem:[%s1225_s3 + $0x28] sm:$0xff]  ;;  %v966_v4 = vld [vmem:[%s1225_s3 + $0x10] sm:$0xff] }
  0x1c   :  { %98 = vmatpush.msra.mxu0 %v545_v36  ;;  %199 = vmatpush.msra.mxu3 %v884_v50  ;;  %v915_v60 = vld [vmem:[%s1225_s3 + $0x40] sm:$0xff]  ;;  %v52_v1 = vld [vmem:[#allocation2 + $0x8] sm:$0xff]  ;;  %v587_v35 = vld [vmem:[%s1224_s2 + $0xf8] sm:$0xff] }
  0x1d   :  { %121 = vmatpush.msra.mxu1 %v58_v37  ;;  %164 = vmatpush.msra.mxu2 %v560_v39  ;;  %v942_v2 = vld [vmem:[%s1225_s3 + $0x20] sm:$0xff]  ;;  %v973_v5 = vld [vmem:[%s1225_s3 + $0x8] sm:$0xff]  ;;  %v586_v36 = vld [vmem:[%s1224_s2 + $0xf0] sm:$0xff] }
  0x1e   :  { %99 = vmatpush.msra.mxu0 %v544_v40  ;;  %200 = vmatpush.msra.mxu3 %v899_v54  ;;  %v980_v6 = vld [vmem:[%s1225_s3] sm:$0xff]  ;;  %v585_v37 = vld [vmem:[%s1224_s2 + $0xe8] sm:$0xff]  ;;  %s604_s3 = sld [smem:[#allocation3 + $0x1]] }
  0x1f   :  { %122 = vmatpush.msra.mxu1 %v57_v41  ;;  %165 = vmatpush.msra.mxu2 %v559_v43  ;;  %v584_v39 = vld [vmem:[%s1224_s2 + $0xe0] sm:$0xff]  ;;  %v305_v41 = vld [vmem:[%s1224_s2 + $0x78] sm:$0xff] }
  0x20   :  { %100 = vmatpush.msra.mxu0 %v543_v44  ;;  %201 = vmatpush.msra.mxu3 %v915_v60  ;;  %v603_v43 = vld [vmem:[%s1224_s2 + $0x178] sm:$0xff] }
  0x21   :  { %123 = vmatpush.msra.mxu1 %v56_v45  ;;  %166 = vmatpush.msra.mxu2 %v558_v47  ;;  %v583_v44 = vld [vmem:[%s1224_s2 + $0xd8] sm:$0xff]  ;;  %v304_v45 = vld [vmem:[%s1224_s2 + $0x70] sm:$0xff] }
  0x22   :  { %101 = vmatpush.msra.mxu0 %v542_v48  ;;  %202 = vmatpush.msra.mxu3 %v921_v61  ;;  %v602_v47 = vld [vmem:[%s1224_s2 + $0x170] sm:$0xff] }
  0x23   :  { %124 = vmatpush.msra.mxu1 %v55_v49  ;;  %167 = vmatpush.msra.mxu2 %v557_v51  ;;  %v582_v48 = vld [vmem:[%s1224_s2 + $0xd0] sm:$0xff]  ;;  %v303_v49 = vld [vmem:[%s1224_s2 + $0x68] sm:$0xff] }
  0x24   :  { %102 = vmatpush.msra.mxu0 %v541_v52  ;;  %203 = vmatpush.msra.mxu3 %v928_v62  ;;  %v601_v51 = vld [vmem:[%s1224_s2 + $0x168] sm:$0xff] }
  0x25   :  { %125 = vmatpush.msra.mxu1 %v54_v53  ;;  %168 = vmatpush.msra.mxu2 %v556_v55  ;;  %v581_v52 = vld [vmem:[%s1224_s2 + $0xc8] sm:$0xff]  ;;  %v302_v53 = vld [vmem:[%s1224_s2 + $0x60] sm:$0xff] }
  0x26   :  { %103 = vmatpush.msra.mxu0 %v540_v56  ;;  %169 = vmatmul.f32.vlgmr.msra.gmra.mxu2 %v134_v57  ;;  %v600_v55 = vld [vmem:[%s1224_s2 + $0x160] sm:$0xff] }
  0x27   :  { %126 = vmatpush.msra.mxu1 %v53_v58  ;;  %104 = vmatmul.f32.vlgmr.msra.gmra.mxu0 %v795_v27  ;;  %v580_v56 = vld [vmem:[%s1224_s2 + $0xc0] sm:$0xff]  ;;  %v301_v58 = vld [vmem:[%s1224_s2 + $0x58] sm:$0xff] }
  0x28   :  { %127 = vmatmul.f32.vlgmr.msra.gmra.mxu1 %v51_v59  ;;  %229 = vmatpush.msrb.mxu0 %v816_v32  ;;  %v599_v59 = vld [vmem:[%s1224_s2 + $0x158] sm:$0xff] }
  0x29   :  { %204 = vmatpush.msra.mxu3 %v935_v0  ;;  %325 = vmatpush.msrb.mxu1 %v587_v35  ;;  %v573_v35 = vld [vmem:[%s1224_s2 + $0x88] sm:$0xff] }
  0x2a   :  { %230 = vmatpush.msrb.mxu0 %v824_v34  ;;  %348 = vmatpush.msrb.mxu2 %v305_v41 }
  0x2b   :  { %205 = vmatpush.msra.mxu3 %v942_v2  ;;  %326 = vmatpush.msrb.mxu1 %v586_v36 }
  0x2c   :  { %231 = vmatpush.msrb.mxu0 %v839_v38  ;;  %349 = vmatpush.msrb.mxu2 %v304_v45  ;;  %v292_v45 = vld [vmem:[%s1224_s2 + $0x10] sm:$0xff] }
  0x2d   :  { %206 = vmatpush.msra.mxu3 %v949_v3  ;;  %327 = vmatpush.msrb.mxu1 %v585_v37  ;;  %v294_v37 = vld [vmem:[%s1224_s2 + $0x20] sm:$0xff] }
  0x2e   :  { %172 = vmatmul.f32.gmra.mxu2 %v135_v63  ;;  %232 = vmatpush.msrb.mxu0 %v854_v42  ;;  %v579_v63 = vld [vmem:[%s1224_s2 + $0xb8] sm:$0xff] }
  0x2f   :  { %107 = vmatmul.f32.gmra.mxu0 %v803_v29  ;;  %207 = vmatpush.msra.mxu3 %v966_v4 }
  0x30   :  { %130 = vmatmul.f32.gmra.mxu1 %v52_v1  ;;  %233 = vmatpush.msrb.mxu0 %v869_v46 }
  0x31   :  { %208 = vmatpush.msra.mxu3 %v973_v5  ;;  %328 = vmatpush.msrb.mxu1 %v584_v39  ;;  %v592_v39 = vld [vmem:[%s1224_s2 + $0x120] sm:$0xff] }
  0x32   :  { %234 = vmatpush.msrb.mxu0 %v884_v50  ;;  %350 = vmatpush.msrb.mxu2 %v303_v49  ;;  %v291_v49 = vld [vmem:[%s1224_s2 + $0x8] sm:$0xff] }
  0x33   :  { %209 = vmatpush.msra.mxu3 %v980_v6  ;;  %329 = vmatpush.msrb.mxu1 %v583_v44  ;;  %v591_v44 = vld [vmem:[%s1224_s2 + $0x118] sm:$0xff] }
  0x34   :  { %235 = vmatpush.msrb.mxu0 %v899_v54  ;;  %351 = vmatpush.msrb.mxu2 %v302_v53  ;;  %v588_v53 = vld [vmem:[%s1224_s2 + $0x100] sm:$0xff] }
  0x35   :  { %390 = vmatpush.msrb.mxu3 %v603_v43  ;;  %330 = vmatpush.msrb.mxu1 %v582_v48  ;;  %v293_v43 = vld [vmem:[%s1224_s2 + $0x18] sm:$0xff]  ;;  %v590_v48 = vld [vmem:[%s1224_s2 + $0x110] sm:$0xff] }
  0x36   :  { %236 = vmatpush.msrb.mxu0 %v915_v60  ;;  %352 = vmatpush.msrb.mxu2 %v301_v58 }
  0x37   :  { %391 = vmatpush.msrb.mxu3 %v602_v47  ;;  %331 = vmatpush.msrb.mxu1 %v581_v52  ;;  %v290_v52 = vld [vmem:[%s1224_s2] sm:$0xff] }
  0x38   :  { %237 = vmatpush.msrb.mxu0 %v921_v61 }
  0x39   :  { %392 = vmatpush.msrb.mxu3 %v601_v51  ;;  %332 = vmatpush.msrb.mxu1 %v580_v56  ;;  %v589_v51 = vld [vmem:[%s1224_s2 + $0x108] sm:$0xff] }
  0x3a   :  { %238 = vmatpush.msrb.mxu0 %v928_v62 }
  0x3b   :  { %393 = vmatpush.msrb.mxu3 %v600_v55  ;;  %333 = vmatpush.msrb.mxu1 %v579_v63 }
  0x3c   :  { %239 = vmatpush.msrb.mxu0 %v935_v0 }
  0x3d   :  { %394 = vmatpush.msrb.mxu3 %v599_v59 }
  0x3e   :  { %240 = vmatpush.msrb.mxu0 %v942_v2 }
  0x40   :  { %241 = vmatpush.msrb.mxu0 %v949_v3 }
  0x42   :  { %242 = vmatpush.msrb.mxu0 %v966_v4 }
  0x44   :  { %243 = vmatpush.msrb.mxu0 %v973_v5 }
  0x46   :  { %244 = vmatpush.msrb.mxu0 %v980_v6 }
  0x48   :  { %431 = vmatpush.msra.mxu0 %v816_v32 }
  0x4a   :  { %432 = vmatpush.msra.mxu0 %v824_v34 }
  0x4c   :  { %433 = vmatpush.msra.mxu0 %v839_v38 }
  0x4e   :  { %434 = vmatpush.msra.mxu0 %v854_v42 }
  0x50   :  { %435 = vmatpush.msra.mxu0 %v869_v46 }
  0x52   :  { %436 = vmatpush.msra.mxu0 %v884_v50 }
  0x54   :  { %437 = vmatpush.msra.mxu0 %v899_v54 }
  0x56   :  { %438 = vmatpush.msra.mxu0 %v915_v60 }
  0x58   :  { %439 = vmatpush.msra.mxu0 %v921_v61 }
  0x5a   :  { %440 = vmatpush.msra.mxu0 %v928_v62 }
  0x5c   :  { %441 = vmatpush.msra.mxu0 %v935_v0 }
  0x5e   :  { %442 = vmatpush.msra.mxu0 %v942_v2 }
  0x60   :  { %443 = vmatpush.msra.mxu0 %v949_v3 }
  0x62   :  { %444 = vmatpush.msra.mxu0 %v966_v4 }
  0x64   :  { %445 = vmatpush.msra.mxu0 %v973_v5 }
  0x66   :  { %446 = vmatpush.msra.mxu0 %v980_v6 }
  0xa4   :  { %v105_v7 = vpop.f32.mrf.mxu0 }
  0xa5   :  { %v128_v8 = vpop.f32.mrf.mxu1 }
  0xa6   :  { %v129_v9 = vadd.f32 %v128_v8, %v105_v7  ;;  %v300_v7 = vld [vmem:[%s1224_s2 + $0x50] sm:$0xff] }
  0xa7   :  { %v598_v8 = vld [vmem:[%s1224_s2 + $0x150] sm:$0xff]  ;;  %353 = vmatpush.msrb.mxu2 %v300_v7 }
  0xa8   :  { %395 = vmatpush.msrb.mxu3 %v598_v8 }
  0xa9   :  { %v170_v10 = vpop.f32.mrf.mxu2 }
  0xaa   :  { %v176_v11 = vadd.f32 %v170_v10, %v129_v9  ;;  %v578_v9 = vld [vmem:[%s1224_s2 + $0xb0] sm:$0xff] }
  0xab   :  { %334 = vmatpush.msrb.mxu1 %v578_v9 }
  0xac   :  { %210 = vmatmul.f32.vlgmr.msra.gmra.mxu3 %v176_v11  ;;  %v108_v12 = vpop.f32.mrf.mxu0 }
  0xad   :  { %v131_v13 = vpop.f32.mrf.mxu1 }
  0xae   :  { %v132_v14 = vadd.f32 %v131_v13, %v108_v12  ;;  %v597_v12 = vld [vmem:[%s1224_s2 + $0x148] sm:$0xff] }
  0xaf   :  { %v577_v13 = vld [vmem:[%s1224_s2 + $0xa8] sm:$0xff]  ;;  %396 = vmatpush.msrb.mxu3 %v597_v12 }
  0xb0   :  { %335 = vmatpush.msrb.mxu1 %v577_v13 }
  0xb1   :  { %v173_v15 = vpop.f32.mrf.mxu2 }
  0xb2   :  { %v177_v16 = vadd.f32 %v173_v15, %v132_v14  ;;  %v298_v15 = vld [vmem:[%s1224_s2 + $0x40] sm:$0xff] }
  0xb4   :  { %213 = vmatmul.f32.gmra.mxu3 %v177_v16 }
 0x12f   :  { %v211_v17 = vpop.f32.mrf.mxu3 }
 0x137   :  { %v214_v18 = vpop.f32.mrf.mxu3 }
 0x138   :  { %v217_v19 = vadd.f32 %v214_v18, %v211_v17  ;;  %v576_v17 = vld [vmem:[%s1224_s2 + $0xa0] sm:$0xff] }
 0x139   :  { %336 = vmatpush.msrb.mxu1 %v576_v17 }
 0x13a   :  { %v218_v20 = vrot.slane %v217_v19, 4 }
 0x13c   :  { %v219_v21 = vadd.f32 %v218_v20, %v217_v19  ;;  %v297_v19 = vld [vmem:[%s1224_s2 + $0x38] sm:$0xff] }
 0x13d   :  { %v595_v20 = vld [vmem:[%s1224_s2 + $0x138] sm:$0xff] }
 0x13e   :  { %v220_v22 = vrot.slane %v219_v21, 2 }
 0x140   :  { %v221_v23 = vadd.f32 %v220_v22, %v219_v21  ;;  %v575_v21 = vld [vmem:[%s1224_s2 + $0x98] sm:$0xff] }
 0x141   :  { %337 = vmatpush.msrb.mxu1 %v575_v21 }
 0x142   :  { %v222_v24 = vrot.slane %v221_v23, 1 }
 0x144   :  { %v223_v25 = vadd.f32 %v222_v24, %v221_v23  ;;  %v296_v23 = vld [vmem:[%s1224_s2 + $0x30] sm:$0xff] }
 0x145   :  { %v594_v24 = vld [vmem:[%s1224_s2 + $0x130] sm:$0xff] }
 0x146   :  { %v224_v26 = vmul.f32 0.001953125, %v223_v25  ;;  %v574_v25 = vld [vmem:[%s1224_s2 + $0x90] sm:$0xff] }
 0x147   :  { %338 = vmatpush.msrb.mxu1 %v574_v25 }
 0x148   :  { %v1000_v28 = vsub.f32 %v176_v11, %v224_v26  ;;  %v1004_v31 = vsub.f32 %v177_v16, %v224_v26  ;;  %v299_v11 = vld [vmem:[%s1224_s2 + $0x48] sm:$0xff]  ;;  %v596_v16 = vld [vmem:[%s1224_s2 + $0x140] sm:$0xff] }
 0x149   :  { %354 = vmatpush.msrb.mxu2 %v299_v11  ;;  %397 = vmatpush.msrb.mxu3 %v596_v16 }
 0x14a   :  { %v227_v30 = vmul.f32 %v1000_v28, %v1000_v28  ;;  %v228_v33 = vmul.f32 %v1004_v31, %v1004_v31  ;;  %339 = vmatpush.msrb.mxu1 %v573_v35 }
 0x14b   :  { %355 = vmatpush.msrb.mxu2 %v298_v15  ;;  %398 = vmatpush.msrb.mxu3 %v595_v20 }
 0x14c   :  { %245 = vmatmul.f32.vlgmr.msrb.gmra.mxu0 %v227_v30  ;;  %v295_v30 = vld [vmem:[%s1224_s2 + $0x28] sm:$0xff] }
 0x14d   :  { %356 = vmatpush.msrb.mxu2 %v297_v19  ;;  %399 = vmatpush.msrb.mxu3 %v594_v24 }
 0x14f   :  { %357 = vmatpush.msrb.mxu2 %v296_v23 }
 0x151   :  { %358 = vmatpush.msrb.mxu2 %v295_v30 }
 0x153   :  { %359 = vmatpush.msrb.mxu2 %v294_v37 }
 0x154   :  { %248 = vmatmul.f32.gmra.mxu0 %v228_v33  ;;  %v593_v33 = vld [vmem:[%s1224_s2 + $0x128] sm:$0xff] }
 0x155   :  { %400 = vmatpush.msrb.mxu3 %v593_v33  ;;  %360 = vmatpush.msrb.mxu2 %v293_v43 }
 0x157   :  { %401 = vmatpush.msrb.mxu3 %v592_v39  ;;  %361 = vmatpush.msrb.mxu2 %v292_v45 }
 0x159   :  { %402 = vmatpush.msrb.mxu3 %v591_v44  ;;  %362 = vmatpush.msrb.mxu2 %v291_v49 }
 0x15b   :  { %403 = vmatpush.msrb.mxu3 %v590_v48  ;;  %363 = vmatpush.msrb.mxu2 %v290_v52 }
 0x15d   :  { %404 = vmatpush.msrb.mxu3 %v589_v51  ;;  %605 = vmatpush.msra.mxu2 %v816_v32 }
 0x15f   :  { %405 = vmatpush.msrb.mxu3 %v588_v53  ;;  %606 = vmatpush.msra.mxu2 %v824_v34  ;;  %v497_v53 = vld [vmem:[%s1228_s6] sm:$0x1] }
 0x161   :  { %621 = vmatpush.msra.mxu3 %v816_v32  ;;  %607 = vmatpush.msra.mxu2 %v839_v38 }
 0x163   :  { %622 = vmatpush.msra.mxu3 %v824_v34  ;;  %608 = vmatpush.msra.mxu2 %v854_v42 }
 0x165   :  { %623 = vmatpush.msra.mxu3 %v839_v38  ;;  %609 = vmatpush.msra.mxu2 %v869_v46 }
 0x167   :  { %624 = vmatpush.msra.mxu3 %v854_v42  ;;  %610 = vmatpush.msra.mxu2 %v884_v50 }
 0x169   :  { %625 = vmatpush.msra.mxu3 %v869_v46  ;;  %611 = vmatpush.msra.mxu2 %v899_v54 }
 0x16b   :  { %626 = vmatpush.msra.mxu3 %v884_v50  ;;  %612 = vmatpush.msra.mxu2 %v915_v60 }
 0x16d   :  { %627 = vmatpush.msra.mxu3 %v899_v54  ;;  %613 = vmatpush.msra.mxu2 %v921_v61 }
 0x16f   :  { %628 = vmatpush.msra.mxu3 %v915_v60  ;;  %614 = vmatpush.msra.mxu2 %v928_v62 }
 0x171   :  { %629 = vmatpush.msra.mxu3 %v921_v61  ;;  %615 = vmatpush.msra.mxu2 %v935_v0 }
 0x173   :  { %630 = vmatpush.msra.mxu3 %v928_v62  ;;  %616 = vmatpush.msra.mxu2 %v942_v2 }
 0x175   :  { %631 = vmatpush.msra.mxu3 %v935_v0  ;;  %617 = vmatpush.msra.mxu2 %v949_v3 }
 0x177   :  { %632 = vmatpush.msra.mxu3 %v942_v2  ;;  %618 = vmatpush.msra.mxu2 %v966_v4 }
 0x179   :  { %633 = vmatpush.msra.mxu3 %v949_v3  ;;  %619 = vmatpush.msra.mxu2 %v973_v5 }
 0x17b   :  { %634 = vmatpush.msra.mxu3 %v966_v4  ;;  %620 = vmatpush.msra.mxu2 %v980_v6 }
 0x17d   :  { %635 = vmatpush.msra.mxu3 %v973_v5 }
 0x17f   :  { %636 = vmatpush.msra.mxu3 %v980_v6 }
 0x1c9   :  { %v246_v40 = vpop.f32.mrf.mxu0 }
 0x1d1   :  { %v249_v57 = vpop.f32.mrf.mxu0 }
 0x1d2   :  { %v252_v1 = vadd.f32 %v249_v57, %v246_v40  ;;  %v572_v40 = vld [vmem:[%s1224_s2 + $0x80] sm:$0xff] }
 0x1d3   :  { %340 = vmatpush.msrb.mxu1 %v572_v40 }
 0x1d4   :  { %v253_v10 = vrot.slane %v252_v1, 4 }
 0x1d5   :  { %466 = vmatpush.msra.mxu1 %v816_v32 }
 0x1d6   :  { %v254_v14 = vadd.f32 %v253_v10, %v252_v1 }
 0x1d7   :  { %467 = vmatpush.msra.mxu1 %v824_v34  ;;  %v260_v34 = vld [vmem:[%s1226_s4] sm:$0x1] }
 0x1d8   :  { %v255_v18 = vrot.slane %v254_v14, 2 }
 0x1d9   :  { %468 = vmatpush.msra.mxu1 %v839_v38 }
 0x1da   :  { %v256_v22 = vadd.f32 %v255_v18, %v254_v14 }
 0x1db   :  { %469 = vmatpush.msra.mxu1 %v854_v42 }
 0x1dc   :  { %v257_v26 = vrot.slane %v256_v22, 1 }
 0x1dd   :  { %470 = vmatpush.msra.mxu1 %v869_v46 }
 0x1de   :  { %v258_v36 = vadd.f32 %v257_v26, %v256_v22 }
 0x1df   :  { %471 = vmatpush.msra.mxu1 %v884_v50  ;;  %v639_v50 = vld [vmem:[%s1227_s5] ss:$0 sm:$0xff]  ;;  %s525_s5 = sld [smem:[#allocation3]] }
 0x1e0   :  { %v259_v41 = vmul.f32 0.001953125, %v258_v36 }
 0x1e1   :  { %472 = vmatpush.msra.mxu1 %v899_v54 }
 0x1e2   :  { %v261_v47 = vadd.f32 1e-05, %v259_v41 }
 0x1e3   :  { %473 = vmatpush.msra.mxu1 %v915_v60 }
 0x1e4   :  { %641 = vrsqrt.f32 %v261_v47  ;;  %vm268_vm1 = vweird.f32 %v261_v47 }
 0x1e5   :  { %474 = vmatpush.msra.mxu1 %v921_v61 }
 0x1e7   :  { %475 = vmatpush.msra.mxu1 %v928_v62 }
 0x1e9   :  { %476 = vmatpush.msra.mxu1 %v935_v0 }
 0x1ea   :  { %v642_v55 = vpop.eup %641 }
 0x1eb   :  { %v263_v56 = vmul.f32 %v642_v55, %v261_v47  ;;  %vm269_vm0 = vweird.f32 %v642_v55  ;;  %477 = vmatpush.msra.mxu1 %v942_v2 }
 0x1ec   :  { %vm270_vm2 = vmor %vm268_vm1, %vm269_vm0 }
 0x1ed   :  { %v264_v57 = vmul.f32 %v642_v55, %v263_v56  ;;  %478 = vmatpush.msra.mxu1 %v949_v3 }
 0x1ef   :  { %v265_v58 = vmul.f32 0.5, %v264_v57  ;;  %479 = vmatpush.msra.mxu1 %v966_v4 }
 0x1f1   :  { %v266_v32 = vsub.f32 1.5, %v265_v58  ;;  %480 = vmatpush.msra.mxu1 %v973_v5 }
 0x1f3   :  { %v267_v38 = vmul.f32 %v642_v55, %v266_v32  ;;  %481 = vmatpush.msra.mxu1 %v980_v6  ;;  %v640_v32 = vld [vmem:[%s1229_s7] ss:$0 sm:$0xff] }
 0x1f5   :  { %v271_v42 = vsel %vm270_vm2, %v642_v55, %v267_v38 }
 0x1f6   :  { %v272_v46 = vmul.f32 %v271_v42, %v260_v34  ;;  %v526_v34 = vstv %s525_s5 }
 0x1f8   :  { %v274_v59 = vperm.slane %v272_v46, 0  ;;  %v522_v46 = vstv %s604_s3 }
 0x1fa   :  { %v276_v54 = vmul.f32 %v274_v59, %v1000_v28  ;;  %v277_v63 = vmul.f32 %v274_v59, %v1004_v31 }
 0x1fc   :  { %v282_v60 = vadd.f32 %v639_v50, %v276_v54  ;;  %v283_v1 = vadd.f32 %v639_v50, %v277_v63  ;;  %v527_v54 = vmul.f32 %v526_v34, %v795_v27  ;;  %v528_v63 = vmul.f32 %v526_v34, %v803_v29 }
 0x1fe   :  { %v284_v7 = vmax.f32 %v282_v60, 0.0  ;;  %v285_v61 = vmax.f32 %v283_v1, 0.0 }
 0x200   :  { %286 = vst [vmem:[#allocation2 + $0x1] sm:$0xff] %v284_v7  ;;  %341 = vmatmul.f32.vlgmr.msrb.gmra.mxu1 %v284_v7 }
 0x201   :  { %287 = vst [vmem:[#allocation2 + $0x9] sm:$0xff] %v285_v61 }
 0x207   :  { %v288_v62 = vld [vmem:[#allocation2] sm:$0xff] }
 0x208   :  { %364 = vmatmul.f32.vlgmr.msrb.gmra.mxu2 %v288_v62  ;;  %v371_v0 = vld [vmem:[#allocation2 + $0x2] sm:$0xff]  ;;  %344 = vmatmul.f32.gmra.mxu1 %v285_v61  ;;  %v372_v3 = vld [vmem:[#allocation2 + $0xa] sm:$0xff] }
 0x209   :  { %406 = vmatmul.f32.vlgmr.msrb.gmra.mxu3 %v371_v0  ;;  %v289_v2 = vld [vmem:[#allocation2 + $0x8] sm:$0xff] }
 0x210   :  { %367 = vmatmul.f32.gmra.mxu2 %v289_v2 }
 0x211   :  { %409 = vmatmul.f32.gmra.mxu3 %v372_v3 }
 0x27d   :  { %v342_v4 = vpop.f32.mrf.mxu1 }
 0x285   :  { %v345_v5 = vpop.f32.mrf.mxu1 }
 0x28b   :  { %v365_v28 = vpop.f32.mrf.mxu2 }
 0x28c   :  { %v366_v31 = vadd.f32 %v365_v28, %v342_v4  ;;  %v407_v8 = vpop.f32.mrf.mxu3 }
 0x28e   :  { %v413_v9 = vadd.f32 %v407_v8, %v366_v31 }
 0x290   :  { %447 = vmatmul.f32.vlgmr.msra.gmra.mxu0 %v413_v9 }
 0x293   :  { %v368_v10 = vpop.f32.mrf.mxu2 }
 0x294   :  { %v369_v11 = vadd.f32 %v368_v10, %v345_v5  ;;  %v410_v12 = vpop.f32.mrf.mxu3 }
 0x296   :  { %v414_v13 = vadd.f32 %v410_v12, %v369_v11 }
 0x298   :  { %450 = vmatmul.f32.vlgmr.msra.gmra.mxu2 %v414_v13 }
 0x30d   :  { %v448_v6 = vpop.f32.mrf.mxu0 }
 0x31b   :  { %v451_v14 = vpop.f32.mrf.mxu2 }
 0x31c   :  { %v454_v15 = vadd.f32 %v451_v14, %v448_v6 }
 0x31e   :  { %v455_v16 = vrot.slane %v454_v15, 4 }
 0x320   :  { %v456_v17 = vadd.f32 %v455_v16, %v454_v15 }
 0x322   :  { %v457_v18 = vrot.slane %v456_v17, 2 }
 0x324   :  { %v458_v19 = vadd.f32 %v457_v18, %v456_v17 }
 0x326   :  { %v459_v20 = vrot.slane %v458_v19, 1 }
 0x328   :  { %v460_v21 = vadd.f32 %v459_v20, %v458_v19 }
 0x32a   :  { %v461_v22 = vmul.f32 0.001953125, %v460_v21 }
 0x32c   :  { %v462_v23 = vsub.f32 %v413_v9, %v461_v22  ;;  %v463_v24 = vsub.f32 %v414_v13, %v461_v22 }
 0x32e   :  { %v464_v25 = vmul.f32 %v462_v23, %v462_v23  ;;  %v465_v26 = vmul.f32 %v463_v24, %v463_v24 }
 0x330   :  { %482 = vmatmul.f32.vlgmr.msra.gmra.mxu1 %v464_v25  ;;  %485 = vmatmul.f32.vlgmr.msra.gmra.mxu3 %v465_v26 }
 0x3ad   :  { %v483_v30 = vpop.f32.mrf.mxu1 }
 0x3b3   :  { %v486_v33 = vpop.f32.mrf.mxu3 }
 0x3b4   :  { %v489_v35 = vadd.f32 %v486_v33, %v483_v30 }
 0x3b6   :  { %v490_v36 = vrot.slane %v489_v35, 4 }
 0x3b8   :  { %v491_v37 = vadd.f32 %v490_v36, %v489_v35 }
 0x3ba   :  { %v492_v39 = vrot.slane %v491_v37, 2 }
 0x3bc   :  { %v493_v40 = vadd.f32 %v492_v39, %v491_v37 }
 0x3be   :  { %v494_v41 = vrot.slane %v493_v40, 1 }
 0x3c0   :  { %v495_v43 = vadd.f32 %v494_v41, %v493_v40 }
 0x3c2   :  { %v496_v44 = vmul.f32 0.001953125, %v495_v43 }
 0x3c4   :  { %v498_v45 = vadd.f32 1e-05, %v496_v44 }
 0x3c6   :  { %643 = vrsqrt.f32 %v498_v45  ;;  %vm505_vm4 = vweird.f32 %v498_v45 }
 0x3cc   :  { %v644_v47 = vpop.eup %643 }
 0x3cd   :  { %v500_v48 = vmul.f32 %v644_v47, %v498_v45  ;;  %vm506_vm3 = vweird.f32 %v644_v47 }
 0x3ce   :  { %vm507_vm5 = vmor %vm505_vm4, %vm506_vm3 }
 0x3cf   :  { %v501_v49 = vmul.f32 %v644_v47, %v500_v48 }
 0x3d1   :  { %v502_v51 = vmul.f32 0.5, %v501_v49 }
 0x3d3   :  { %v503_v52 = vsub.f32 1.5, %v502_v51 }
 0x3d5   :  { %v504_v55 = vmul.f32 %v644_v47, %v503_v52 }
 0x3d7   :  { %v508_v56 = vsel %vm507_vm5, %v644_v47, %v504_v55 }
 0x3d8   :  { %v509_v57 = vmul.f32 %v508_v56, %v497_v53 }
 0x3da   :  { %v511_v58 = vperm.slane %v509_v57, 0 }
 0x3dc   :  { %v513_v38 = vmul.f32 %v511_v58, %v462_v23  ;;  %v514_v42 = vmul.f32 %v511_v58, %v463_v24 }
 0x3de   :  { %v519_v59 = vadd.f32 %v640_v32, %v513_v38  ;;  %v520_v50 = vadd.f32 %v640_v32, %v514_v42 }
 0x3e0   :  { %v523_v60 = vmul.f32 %v522_v46, %v519_v59  ;;  %v524_v1 = vmul.f32 %v522_v46, %v520_v50 }
 0x3e2   :  { %v529_v7 = vadd.f32 %v527_v54, %v523_v60  ;;  %v530_v61 = vadd.f32 %v528_v63, %v524_v1 }
 0x3e4   :  { %v531_v62 = vmax.f32 %v529_v7, 0.0  ;;  %v532_v0 = vmax.f32 %v530_v61, 0.0 }
 0x3e6   :  { %533 = vst [vmem:[%s1231_s9] sm:$0xff] %v531_v62 }
 0x3e7   :  { %534 = vst [vmem:[%s1231_s9 + $0x8] sm:$0xff] %v532_v0 }
 0x3e8   :  { %539 = vsyncpa [#allocation4], 1 }

</bundles_post_ra>
